<compile_context>
chip_gen: v7x
topology: tpu7x:2x2x1
jax: 0.10.0
libtpu: 0.0.40
codegen_flags: <defaults>
</compile_context>

<pallas_src>
import jax
import jax.numpy as jnp
from jax.experimental import pallas as pl
from jax.experimental.pallas import tpu as pltpu

# Set to jnp.bfloat16 on v6e / v7x for peak MXU rate once the kernel is MXU-bound.
MATMUL_DTYPE = jnp.float32


def _mm(lhs, rhs):
    return jnp.dot(lhs.astype(MATMUL_DTYPE), rhs.astype(MATMUL_DTYPE),
                   preferred_element_type=jnp.float32)


def decoder_kernel(a_ref, y_ref, w1_ref, w2_ref, wmu_ref, wls_ref, out_ref):
    # a_ref : (2+L, BC)  rows = [x, 1, phi_0 .. phi_{L-1}]  (points on lanes)
    # y_ref : (1, BC)
    # w1_ref: (H+1, 2+L) first layer, bias folded; last row regenerates the ones row
    # w2_ref: (H+1, H+1) second layer, bias folded; last row regenerates the ones row
    # wmu_ref, wls_ref: (1, H+1) final layer rows (mu / log_sigma), bias folded
    a = a_ref[...]

    h1 = jnp.maximum(_mm(w1_ref[...], a), 0.0)      # (H+1, BC), row H == 1.0
    h2 = jnp.maximum(_mm(w2_ref[...], h1), 0.0)     # (H+1, BC), row H == 1.0

    mu = _mm(wmu_ref[...], h2)                      # (1, BC)
    ls = _mm(wls_ref[...], h2)                      # (1, BC)  (log sigma)

    y = y_ref[...]                                  # (1, BC)
    r = (y - mu) * jnp.exp(-ls)
    out_ref[...] = (0.5 * r * r + ls).astype(out_ref.dtype)


def _pack_params(params):
    """Fold biases into the weights (augmented ones-row trick) and transpose so the
    kernel can run the MLP in (features, points) layout with plain 2D dots."""
    w1, b1 = params["w1"], params["b1"]     # (1+L, H), (H,)
    w2, b2 = params["w2"], params["b2"]     # (H, H),   (H,)
    w3, b3 = params["w3"], params["b3"]     # (H, 2),   (2,)
    H = w2.shape[0]
    L = w1.shape[0] - 1

    # Layer 1: input rows are [x, 1, phi...]; output rows are [h_0..h_{H-1}, 1].
    w1f_top = jnp.concatenate([w1[0:1, :].T, b1[:, None], w1[1:, :].T], axis=1)  # (H, 2+L)
    w1f_bot = jnp.zeros((1, 2 + L), jnp.float32).at[0, 1].set(1.0)               # picks the ones row
    w1f = jnp.concatenate([w1f_top, w1f_bot], axis=0)                            # (H+1, 2+L)

    # Layer 2: consumes [h, 1] rows, produces [h', 1] rows.
    w2f_top = jnp.concatenate([w2.T, b2[:, None]], axis=1)                        # (H, H+1)
    w2f_bot = jnp.zeros((1, H + 1), jnp.float32).at[0, H].set(1.0)
    w2f = jnp.concatenate([w2f_top, w2f_bot], axis=0)                             # (H+1, H+1)

    # Final layer split into the two output channels (mu, log_sigma), bias folded.
    w3mu = jnp.concatenate([w3[:, 0], b3[0:1]])[None, :]                          # (1, H+1)
    w3ls = jnp.concatenate([w3[:, 1], b3[1:2]])[None, :]                          # (1, H+1)
    return w1f, w2f, w3mu, w3ls


def _choose_block_cols(total_cols, max_cols=2048):
    """Largest lane-dense (multiple of 128) divisor that still yields >= 2 grid steps
    (megacore / v7x 2-TC sharding); falls back to a single full-width step."""
    best = None
    c = 128
    while c <= min(total_cols // 2, max_cols):
        if total_cols % c == 0:
            best = c
        c += 128
    return best if best is not None else total_cols


def gaussian_decoder_forward(x, y, phi, params, block_cols=None):
    """x, y: (B, N, 1); phi: (S, B, L).  Returns minus_log_prob of shape (S, B, N)."""
    S, B, L = phi.shape
    Bx, N, in_dim = x.shape
    assert in_dim == 1 and Bx == B and y.shape == x.shape
    H = params["w2"].shape[0]
    R = S * B * N  # total number of (phi-sample, batch, point) rows

    # Transposed, bias-augmented MLP input: rows = [x, 1, phi_0..phi_{L-1}], cols = points.
    x_row = jnp.broadcast_to(x[None, :, :, 0], (S, B, N)).reshape(1, R)
    ones_row = jnp.ones((1, R), jnp.float32)
    phi_rows = jnp.broadcast_to(phi[:, :, None, :], (S, B, N, L)).reshape(R, L).T   # (L, R)
    a = jnp.concatenate([x_row, ones_row, phi_rows], axis=0).astype(jnp.float32)    # (2+L, R)
    y_row = jnp.broadcast_to(y[None, :, :, 0], (S, B, N)).reshape(1, R).astype(jnp.float32)

    w1f, w2f, w3mu, w3ls = _pack_params(params)

    bc = block_cols if block_cols is not None else _choose_block_cols(R)
    assert R % bc == 0, f"block_cols={bc} must divide total points {R}"
    grid = (R // bc,)

    const2d = lambda shape: pl.BlockSpec(shape, lambda g: (0, 0))

    out_flat = pl.pallas_call(
        decoder_kernel,
        out_shape=jax.ShapeDtypeStruct((1, R), jnp.float32),
        grid_spec=pltpu.PrefetchScalarGridSpec(
            num_scalar_prefetch=0,
            grid=grid,
            in_specs=[
                pl.BlockSpec((2 + L, bc), lambda g: (0, g)),   # augmented input slab
                pl.BlockSpec((1, bc), lambda g: (0, g)),       # targets y
                const2d((H + 1, 2 + L)),                       # W1 (bias folded)
                const2d((H + 1, H + 1)),                       # W2 (bias folded)
                const2d((1, H + 1)),                           # mu head row
                const2d((1, H + 1)),                           # log_sigma head row
            ],
            out_specs=pl.BlockSpec((1, bc), lambda g: (0, g)),
        ),
        compiler_params=pltpu.CompilerParams(
            dimension_semantics=("parallel",)),
    )(a, y_row, w1f, w2f, w3mu, w3ls)

    return out_flat.reshape(S, B, N)


def _init_params(key, latent_dim, hid_dim):
    """Deterministic synthetic parameter init (fan-in scaled normals), (in,out) layout."""
    ks = jax.random.split(key, 6)

    def lin(kw, kb, fan_in, fan_out):
        s = 1.0 / jnp.sqrt(fan_in)
        w = jax.random.normal(kw, (fan_in, fan_out), jnp.float32) * s
        b = jax.random.normal(kb, (fan_out,), jnp.float32) * s
        return w, b

    p = {}
    p["w1"], p["b1"] = lin(ks[0], ks[1], 1 + latent_dim, hid_dim)
    p["w2"], p["b2"] = lin(ks[2], ks[3], hid_dim, hid_dim)
    p["w3"], p["b3"] = lin(ks[4], ks[5], hid_dim, 2)
    return p


def _reference_forward(x, y, phi, p):
    """Pure-JAX transcription of the PyTorch GaussianDecoder.forward."""
    S = phi.shape[0]
    B, N, _ = x.shape
    L = phi.shape[-1]
    with jax.default_matmul_precision("highest"):
        xb = jnp.broadcast_to(x[None], (S, B, N, 1))
        yb = jnp.broadcast_to(y[None], (S, B, N, 1))
        z = jnp.broadcast_to(phi[:, :, None, :], (S, B, N, L))
        xz = jnp.concatenate([xb, z], axis=-1)
        h = jnp.maximum(xz @ p["w1"] + p["b1"], 0.0)
        h = jnp.maximum(h @ p["w2"] + p["b2"], 0.0)
        e = h @ p["w3"] + p["b3"]
        return 0.5 * jnp.square((yb[..., 0] - e[..., 0]) / jnp.exp(e[..., 1])) + e[..., 1]


if __name__ == "__main__":
    key = jax.random.PRNGKey(0)
    kx, ky, kphi, kp = jax.random.split(key, 4)

    num_phi_samples, batch, num_points = 2, 4, 128
    latent_dim, hid_dim = 32, 64

    x = jax.random.normal(kx, (batch, num_points, 1), jnp.float32)
    y = jax.random.normal(ky, (batch, num_points, 1), jnp.float32)
    phi = jax.random.normal(kphi, (num_phi_samples, batch, latent_dim), jnp.float32)
    params = _init_params(kp, latent_dim, hid_dim)

    out = gaussian_decoder_forward(x, y, phi, params)
    jax.block_until_ready(out)

    ref = _reference_forward(x, y, phi, params)
    assert out.shape == (num_phi_samples, batch, num_points)
    max_err = float(jnp.max(jnp.abs(out - ref)))
    assert jnp.allclose(out, ref, atol=2e-2, rtol=2e-2), f"max abs err {max_err}"
    print("KERNEL_OK")
</pallas_src>

<mosaic_0001>
module attributes {stable_mosaic.version = 11 : i64} {
  func.func @decoder_kernel(%arg0: i32, %arg1: memref<34x512xf32, #tpu.memory_space<vmem>>, %arg2: memref<1x512xf32, #tpu.memory_space<vmem>>, %arg3: memref<65x34xf32, #tpu.memory_space<vmem>>, %arg4: memref<65x65xf32, #tpu.memory_space<vmem>>, %arg5: memref<1x65xf32, #tpu.memory_space<vmem>>, %arg6: memref<1x65xf32, #tpu.memory_space<vmem>>, %arg7: memref<1x512xf32, #tpu.memory_space<vmem>>) attributes {dimension_semantics = [#tpu.dimension_semantics<parallel>], iteration_bounds = array<i64: 2>, scalar_prefetch = 0 : i64, scratch_operands = 0 : i64, tpu.core_type = #tpu.core_type<tc>, window_params = [{transform_indices = @transform_0, window_bounds = array<i64: 34, 512>}, {transform_indices = @transform_1, window_bounds = array<i64: 1, 512>}, {pipeline_mode = #tpu.pipeline_mode<synchronous>, transform_indices = @transform_2, window_bounds = array<i64: 65, 34>}, {pipeline_mode = #tpu.pipeline_mode<synchronous>, transform_indices = @transform_3, window_bounds = array<i64: 65, 65>}, {pipeline_mode = #tpu.pipeline_mode<synchronous>, transform_indices = @transform_4, window_bounds = array<i64: 1, 65>}, {pipeline_mode = #tpu.pipeline_mode<synchronous>, transform_indices = @transform_5, window_bounds = array<i64: 1, 65>}, {transform_indices = @transform_6, window_bounds = array<i64: 1, 512>}]} {
    %c0 = arith.constant 0 : index
    %c0_0 = arith.constant 0 : index
    %0 = vector.load %arg1[%c0, %c0_0] : memref<34x512xf32, #tpu.memory_space<vmem>>, vector<34x512xf32>
    %c0_1 = arith.constant 0 : index
    %c0_2 = arith.constant 0 : index
    %1 = vector.load %arg3[%c0_1, %c0_2] : memref<65x34xf32, #tpu.memory_space<vmem>>, vector<65x34xf32>
    %cst = arith.constant dense<0.000000e+00> : vector<65x512xf32>
    %2 = tpu.matmul %1, %0, %cst {dimension_numbers = #tpu.dot_dimension_numbers<[1], [0], [0], [1], [0, 0, 1, 1], [], []>} : vector<65x34xf32>, vector<34x512xf32>, vector<65x512xf32> -> vector<65x512xf32>
    %cst_3 = arith.constant 0.000000e+00 : f32
    %3 = vector.broadcast %cst_3 : f32 to vector<65x512xf32>
    %4 = arith.maximumf %2, %3 : vector<65x512xf32>
    %c0_4 = arith.constant 0 : index
    %c0_5 = arith.constant 0 : index
    %5 = vector.load %arg4[%c0_4, %c0_5] : memref<65x65xf32, #tpu.memory_space<vmem>>, vector<65x65xf32>
    %cst_6 = arith.constant dense<0.000000e+00> : vector<65x512xf32>
    %6 = tpu.matmul %5, %4, %cst_6 {dimension_numbers = #tpu.dot_dimension_numbers<[1], [0], [0], [1], [0, 0, 1, 1], [], []>} : vector<65x65xf32>, vector<65x512xf32>, vector<65x512xf32> -> vector<65x512xf32>
    %cst_7 = arith.constant 0.000000e+00 : f32
    %7 = vector.broadcast %cst_7 : f32 to vector<65x512xf32>
    %8 = arith.maximumf %6, %7 : vector<65x512xf32>
    %c0_8 = arith.constant 0 : index
    %c0_9 = arith.constant 0 : index
    %9 = vector.load %arg5[%c0_8, %c0_9] : memref<1x65xf32, #tpu.memory_space<vmem>>, vector<1x65xf32>
    %cst_10 = arith.constant dense<0.000000e+00> : vector<1x512xf32>
    %10 = tpu.matmul %9, %8, %cst_10 {dimension_numbers = #tpu.dot_dimension_numbers<[1], [0], [0], [1], [0, 0, 1, 1], [], []>} : vector<1x65xf32>, vector<65x512xf32>, vector<1x512xf32> -> vector<1x512xf32>
    %c0_11 = arith.constant 0 : index
    %c0_12 = arith.constant 0 : index
    %11 = vector.load %arg6[%c0_11, %c0_12] : memref<1x65xf32, #tpu.memory_space<vmem>>, vector<1x65xf32>
    %cst_13 = arith.constant dense<0.000000e+00> : vector<1x512xf32>
    %12 = tpu.matmul %11, %8, %cst_13 {dimension_numbers = #tpu.dot_dimension_numbers<[1], [0], [0], [1], [0, 0, 1, 1], [], []>} : vector<1x65xf32>, vector<65x512xf32>, vector<1x512xf32> -> vector<1x512xf32>
    %c0_14 = arith.constant 0 : index
    %c0_15 = arith.constant 0 : index
    %13 = vector.load %arg2[%c0_14, %c0_15] : memref<1x512xf32, #tpu.memory_space<vmem>>, vector<1x512xf32>
    %14 = arith.subf %13, %10 : vector<1x512xf32>
    %cst_16 = arith.constant 0.000000e+00 : f32
    %15 = vector.broadcast %cst_16 : f32 to vector<1x512xf32>
    %16 = arith.subf %15, %12 : vector<1x512xf32>
    %17 = math.exp %16 : vector<1x512xf32>
    %18 = arith.mulf %14, %17 : vector<1x512xf32>
    %cst_17 = arith.constant 5.000000e-01 : f32
    %19 = vector.broadcast %cst_17 : f32 to vector<1x512xf32>
    %20 = arith.mulf %19, %18 : vector<1x512xf32>
    %21 = arith.mulf %20, %18 : vector<1x512xf32>
    %22 = arith.addf %21, %12 : vector<1x512xf32>
    %c0_18 = arith.constant 0 : index
    %c0_19 = arith.constant 0 : index
    %23 = vector.load %arg7[%c0_18, %c0_19] : memref<1x512xf32, #tpu.memory_space<vmem>>, vector<1x512xf32>
    tpu.vector_store %arg7[%c0_18, %c0_19], %22 {strides = array<i32>} : memref<1x512xf32, #tpu.memory_space<vmem>>, vector<1x512xf32>,
    return
  }
  func.func @transform_0(%arg0: i32) -> (i32, i32) {
    %c0_i32 = arith.constant 0 : i32
    %c0_i32_0 = arith.constant 0 : i32
    return %c0_i32, %arg0 : i32, i32
  }
  func.func @transform_1(%arg0: i32) -> (i32, i32) {
    %c0_i32 = arith.constant 0 : i32
    %c0_i32_0 = arith.constant 0 : i32
    return %c0_i32, %arg0 : i32, i32
  }
  func.func @transform_2(%arg0: i32) -> (i32, i32) {
    %c0_i32 = arith.constant 0 : i32
    %c0_i32_0 = arith.constant 0 : i32
    %c0_i32_1 = arith.constant 0 : i32
    return %c0_i32, %c0_i32_0 : i32, i32
  }
  func.func @transform_3(%arg0: i32) -> (i32, i32) {
    %c0_i32 = arith.constant 0 : i32
    %c0_i32_0 = arith.constant 0 : i32
    %c0_i32_1 = arith.constant 0 : i32
    return %c0_i32, %c0_i32_0 : i32, i32
  }
  func.func @transform_4(%arg0: i32) -> (i32, i32) {
    %c0_i32 = arith.constant 0 : i32
    %c0_i32_0 = arith.constant 0 : i32
    %c0_i32_1 = arith.constant 0 : i32
    return %c0_i32, %c0_i32_0 : i32, i32
  }
  func.func @transform_5(%arg0: i32) -> (i32, i32) {
    %c0_i32 = arith.constant 0 : i32
    %c0_i32_0 = arith.constant 0 : i32
    %c0_i32_1 = arith.constant 0 : i32
    return %c0_i32, %c0_i32_0 : i32, i32
  }
  func.func @transform_6(%arg0: i32) -> (i32, i32) {
    %c0_i32 = arith.constant 0 : i32
    %c0_i32_0 = arith.constant 0 : i32
    return %c0_i32, %arg0 : i32, i32
  }
}

</mosaic_0001>

<bundles_post_ra>
// kernel: tpu_custom_call.1
= control target key start
LH: loop header
LB: loop body
LE: loop exit
PB: predicated region body
PF: predicated region fallthrough
CT: control target
= control target key end

     0   :  { %11 = vsyncpa [#allocation3], 0  ;;  %s2218_s0 = inlined_call_operand.hbm [shape: f32[34,1024], index: 0, kind: input, shape index: {}]   ;;  %s2219_s1 = inlined_call_operand.vmem [shape: f32[1,1024], index: 1, kind: input, shape index: {}]   ;;  %s2220_s2 = inlined_call_operand.vmem [shape: f32[65,34], index: 2, kind: input, shape index: {}]   ;;  %s2221_s3 = inlined_call_operand.vmem [shape: f32[65,65], index: 3, kind: input, shape index: {}]   ;;  %s2222_s4 = inlined_call_operand.vmem [shape: f32[1,65], index: 4, kind: input, shape index: {}]   ;;  %s2223_s5 = inlined_call_operand.vmem [shape: f32[1,65], index: 5, kind: input, shape index: {}]   ;;  %s2224_s6 = inlined_call_operand.hbm [shape: f32[1,1024], index: 6, kind: output, shape index: {}]  }
   0x1   :  { %13 = vsyncpa [#allocation3 + $0x1], 0 }
   0x2   :  { %14 = vsyncpa [#allocation4], 0 }
   0x3   :  { %16 = vsyncpa [#allocation4 + $0x1], 0  ;;  %s1851_s21 = smov 0   ;;  %s1853_s22 = smov 0  }
   0x4   :  { %s1855_s23 = smov 0   ;;  %s1857_s24 = smov 0  }
   0x5 LB: > { %s1872_s25 = sadd.s32 4294967295, %s1807_s24   ;;  %s1467_s26 = sadd.s32 4294967294, %s1807_s24   ;;  %s1807_s24 = sphi %s1857_s24, %s2237_s24   ;;  %s1803_s23 = sphi %s1855_s23, %s2236_s23   ;;  %s1799_s22 = sphi %s1853_s22, %s2235_s22   ;;  %s1795_s21 = sphi %s1851_s21, %s2234_s21  }
   0x6   : > { %s1876_s27 = sadd.s32 1, %s1807_s24   ;;  %s29_s28 = sadd.s32 1, %s1803_s23 }
   0x7   : > { %s26_s29 = ssub.s32 %s1807_s24, %s1876_s27  ;;  %p36_p0 = scmp.ne.s32.totalorder %s1803_s23, %s1799_s22 }
   0x8   : > { %p27_p1 = scmp.eq.s32.totalorder %s26_s29, 0  ;;  %p37_p2 = scmp.eq.s32.totalorder %s1807_s24, 0 }
   0x9   : > { %p42_p3 = scmp.ne.s32.totalorder %s1799_s22, %s1795_s21  ;;  %p43_p4 = scmp.eq.s32.totalorder %s1872_s25, 0 }
   0xa   : > { %s1888_s30 = scalar_select %p27_p1, %s1803_s23, %s29_s28  }
   0xb   : > { %p38_p5 = por %p37_p2, %p36_p0  ;;  %p1890_p6 = por %p43_p4, %p42_p3 }
   0xc   : > { %p176_p7 = scmp.eq.s32.totalorder %s1872_s25, 1  ;;  %p182_p8 = scmp.eq.s32.totalorder %s1467_s26, 1 }
   0xd   : > { %p1664_p10 = scmp.lt.s32.totalorder %s1807_s24, 2  ;;  %s214_s10 = sand.u32 1, %s1803_s23  }
   0xe   : > { %p1897_p11 = por %p176_p7, %p36_p0  ;;  %p1901_p12 = por %p182_p8, %p42_p3 }
   0xf   : > { %s1536_s11 = sshll.u32 %s1807_s24, 9  ;;  %s1650_s12 = smul.u32 160, %s214_s10 }
  0x10   : > { %s2227_s8 = scalar_select %p1897_p11, 1, 0 }
  0x11   : > { %s2228_s9 = scalar_select %p1901_p12, 1, 0 }
  0x12   : > { %s1910_s15 = scalar_lea.hbm %s2218_s0, %s1536_s11  ;;  %p1912_p13 = pnand %p1664_p10, %p38_p5 }
  0x13   : > { %s218_s17 = scalar_lea.vmem [#allocation2], %s1650_s12  ;;  %s1919_s19 = scalar_lea.sflag [#allocation3], %s214_s10 }
  0x14   : > { %s225_s18 = sshll.u32 %s218_s17, 4  ;;  %s1711_s20 = scalar_lea.hbm %s1910_s15, 2560  ;;  %s1916_s18 = int_to_ptr.vmem [resolvable:$true] %s225_s18 }
  0x15   : > { %p1712_p1 = scmp.ne.s32.totalorder %s1910_s15, %s1711_s20  ;;  %p1713_p2 = pneg %p1912_p13 }
  0x16   : > { %s1716_s29 = scalar_lea.hbm %s2218_s0, 5120  ;;  %p1717_p5 = scmp.lt.u32.totalorder %s1910_s15, %s2218_s0 }
  0x17   : > { %p1714_p3 = pnand %p1713_p2, %p1712_p1  ;;  %p1718_p7 = scmp.lt.u32.totalorder %s1716_s29, %s1711_s20 }
  0x18   : > { %p1720_p10 = scmp.lt.u32.totalorder %s1711_s20, %s1910_s15 }
  0x19   : > { %p1715_p4 = pneg %p1714_p3  ;;  %p1719_p8 = por %p1718_p7, %p1717_p5 }
  0x1b   : > { %p1721_p9 = por %p1720_p10, %p1719_p8 }
  0x1d   : > { %p1722_p0 = pnand %p1721_p9, %p1715_p4 }
  0x1f   : > { %1725 = shalt.err (!%p1722_p0)
}
  0x20   : > { %s1726_s10 = scalar_lea.vmem %s1916_s18, 2560  ;;  %s1809_s13 = smov [#allocation2]  }
  0x21   : > { %p1727_p1 = scmp.ne.s32.totalorder %s1916_s18, %s1726_s10  ;;  %s1731_s14 = sshll.u32 %s1809_s13, 4  ;;  %s1732_s14 = int_to_ptr.vmem [resolvable:$false] %s1731_s14 }
  0x22   : > { %s1733_s17 = scalar_lea.vmem %s1732_s14, 5120  ;;  %p1734_p11 = scmp.lt.s32.totalorder %s1916_s18, %s1732_s14 }
  0x23   : > { %p1729_p3 = pnand %p1727_p1, %p1713_p2  ;;  %p1735_p5 = scmp.lt.s32.totalorder %s1733_s17, %s1726_s10 }
  0x25   : > { %p1730_p12 = pneg %p1729_p3  ;;  %p1736_p7 = por %p1735_p5, %p1734_p11 }
  0x27   : > { %p1737_p8 = pnand %p1736_p7, %p1730_p12 }
  0x29   : > { %1740 = shalt.err (!%p1737_p8)
}
  0x2a   : > { %s1810_s20 = smov 1024   ;;  %s1811_s26 = smov 512  }
  0x2b   : > { %s1812_s28 = smov 32   ;;  %p241_p9 = scmp.lt.s32.totalorder %s1807_s24, 3 }
  0x2c   : > { %1659 = dma.hbm_to_vmem [thread:$0]  (!%p1912_p13), %s1910_s15, 2560, %s1916_s18, %s1919_s19, %s1810_s20, %s1811_s26, %s1812_s28  }
  0x2d   : > { %p2230_p0 = scmp.ge.s32.totalorder %s1807_s24, 1 }
  0x2f   : > { %p242_p2 = pnand %p2230_p0, %p241_p9 }
  0x30   : > { %s1951_s29 = sand.u32 (!%p242_p2), 1, %s1799_s22  }
  0x31   : > { %245 = sbr.rel (%p242_p2) target bundleno = 852 (0x354), region = 44  ;;  %s248_s12 = scalar_lea.sflag (!%p242_p2), [#allocation3], %s1951_s29 }
  0x32   : > { %s1651_s11 = smul.u32 (!%p242_p2), 160, %s1951_s29 }
  0x34   : > { %s1955_s10 = scalar_lea.vmem (!%p242_p2), [#allocation2], %s1651_s11 }
  0x38   : > { %1786 = dma.done.wait (%p1890_p6), %s248_s12, 2560  }
  0x39   : > { %1788 = vsyncadd (%p1890_p6), %s248_s12, 4294964736  ;;  %v1813_v0 = vmov 0.0   ;;  %v292_v1 = vld [vmem:[%s1955_s10 + $0x8] sm:$0xff]  ;;  %v294_v3 = vld [vmem:[%s1955_s10 + $0x18] sm:$0xff]  ;;  %vm348_vm0 = vcmask 1041408   ;;  %vm320_vm1 = vcmask 277504  }
  0x3a   : > { %425 = vmatprep.mubr.f32.mxu0 %v1813_v0  ;;  %544 = vmatprep.mubr.f32.mxu1 %v1813_v0  ;;  %v296_v2 = vld [vmem:[%s1955_s10 + $0x28] sm:$0xff]  ;;  %v298_v5 = vld [vmem:[%s1955_s10 + $0x38] sm:$0xff]  ;;  %v291_v6 = vld [vmem:[%s1955_s10] sm:$0xff]  ;;  %vm672_vm2 = vcmask 1040384   ;;  %vm644_vm3 = vcmask 531456   ;;  %s1474_s12 = sshll.u32 %s1872_s25, 2 }
  0x3b   : > { %v1538_v4 = vpack.c.bf16 %v296_v2, %v292_v1  ;;  %v295_v7 = vld [vmem:[%s1955_s10 + $0x20] sm:$0xff]  ;;  %v1546_v8 = vpack.c.bf16 %v298_v5, %v294_v3  ;;  %v293_v10 = vld [vmem:[%s1955_s10 + $0x10] sm:$0xff]  ;;  %v300_v12 = vld [vmem:[%s1955_s10 + $0x48] sm:$0xff]  ;;  %p286_p6 = scmp.lt.s32.totalorder %s1474_s12, 7  ;;  %s1473_s16 = sshll.u32 %s1951_s29, 2 }
  0x3c   : > { %v1540_v9 = vpack.c.bf16 %v295_v7, %v291_v6  ;;  %v297_v11 = vld [vmem:[%s1955_s10 + $0x30] sm:$0xff]  ;;  %v304_v14 = vld [vmem:[%s1955_s10 + $0x68] sm:$0xff]  ;;  %v302_v15 = vld [vmem:[%s1955_s10 + $0x58] sm:$0xff]  ;;  %s1537_s18 = sshll.u32 %s1872_s25, 6  ;;  %s283_s19 = scalar_lea.vmem [#allocation5], %s1473_s16 }
  0x3d   : > { %1539 = vmatprep.subr.bf16.mxu0 %v1538_v4  ;;  %v1548_v13 = vpack.c.bf16 %v297_v11, %v293_v10  ;;  %v306_v16 = vld [vmem:[%s1955_s10 + $0x78] sm:$0xff]  ;;  %1547 = vmatprep.subr.bf16.mxu1 %v1546_v8  ;;  %v1542_v17 = vpack.c.bf16 %v304_v14, %v300_v12  ;;  %v299_v19 = vld [vmem:[%s1955_s10 + $0x40] sm:$0xff]  ;;  %v301_v21 = vld [vmem:[%s1955_s10 + $0x50] sm:$0xff]  ;;  %s2239_s12 = smov (!%p286_p6, %s1474_s12), 7  ;;  %s1388_s13 = sshll.u32 %s283_s19, 4  ;;  %s2176_s13 = int_to_ptr.vmem [resolvable:$true] %s1388_s13 }
  0x3e   : > { %1541 = vmatpush1.bf16.msra.mxu0 %v1540_v9  ;;  %v1550_v18 = vpack.c.bf16 %v306_v16, %v302_v15  ;;  %v303_v20 = vld [vmem:[%s1955_s10 + $0x60] sm:$0xff]  ;;  %v305_v23 = vld [vmem:[%s1955_s10 + $0x70] sm:$0xff]  ;;  %v308_v25 = vld [vmem:[%s1955_s10 + $0x88] sm:$0x3]  ;;  %s288_s15 = scalar_lea.vmem %s2219_s1, %s2239_s12  ;;  %s2174_s20 = scalar_lea.hbm %s2224_s6, %s1537_s18 }
  0x3f   : > { %1549 = vmatpush1.bf16.msra.mxu1 %v1548_v13  ;;  %v1544_v22 = vpack.c.bf16 %v303_v20, %v299_v19  ;;  %1543 = vmatprep.subr.bf16.mxu0 %v1542_v17  ;;  %v1552_v24 = vpack.c.bf16 %v305_v23, %v301_v21  ;;  %v310_v26 = vld [vmem:[%s1955_s10 + $0x98] sm:$0x3]  ;;  %v307_v27 = vld [vmem:[%s1955_s10 + $0x80] sm:$0x3]  ;;  %v309_v28 = vld [vmem:[%s1955_s10 + $0x90] sm:$0x3] }
  0x40   : > { %1551 = vmatprep.subr.bf16.mxu1 %v1550_v18  ;;  %v311_v29 = vld [vmem:[%s2220_s2] sm:$0xff]  ;;  %v312_v30 = vld [vmem:[%s2220_s2 + $0x8] sm:$0xff]  ;;  %v313_v31 = vld [vmem:[%s2220_s2 + $0x10] sm:$0xff]  ;;  %s1374_s26 = scalar_lea.sflag [#allocation4], %s1951_s29  ;;  %s1741_s28 = scalar_lea.vmem %s2176_s13, 64 }
  0x41   : > { %v314_v32 = vld [vmem:[%s2220_s2 + $0x18] sm:$0xff]  ;;  %v315_v33 = vld [vmem:[%s2220_s2 + $0x20] sm:$0xff]  ;;  %v316_v34 = vld [vmem:[%s2220_s2 + $0x28] sm:$0xff]  ;;  %p1742_p11 = scmp.ne.s32.totalorder %s2176_s13, %s1741_s28  ;;  %p2231_p12 = scmp.ne.s32.totalorder %s2227_s8, 0 }
  0x42   : > { %1545 = vmatpush1.bf16.msra.mxu0 %v1544_v22  ;;  %v317_v35 = vld [vmem:[%s2220_s2 + $0x30] sm:$0xff]  ;;  %v318_v36 = vld [vmem:[%s2220_s2 + $0x38] sm:$0xff]  ;;  %v319_v37 = vld [vmem:[%s2220_s2 + $0x40] sm:$0x1]  ;;  %s1815_s25 = smov [#allocation5]  }
  0x43   : > { %1553 = vmatpush1.bf16.msra.mxu1 %v1552_v24  ;;  %1475 = vmatprep.subr.msk.mxu0 %vm348_vm0, %v308_v25  ;;  %p1743_p13 = pnand %p1742_p11, %p2231_p12  ;;  %s1745_s11 = sshll.u32 %s1815_s25, 4  ;;  %s1746_s11 = int_to_ptr.vmem [resolvable:$false] %s1745_s11 }
  0x44   : > { %1486 = vmatprep.subr.msk.mxu1 %vm348_vm0, %v310_v26  ;;  %s1747_s12 = scalar_lea.vmem %s1746_s11, 128  ;;  %p1748_p10 = scmp.lt.s32.totalorder %s2176_s13, %s1746_s11 }
  0x45   : > { %p1744_p4 = pneg %p1743_p13  ;;  %p1749_p1 = scmp.lt.s32.totalorder %s1747_s12, %s1741_s28 }
  0x46   : > { %1476 = vmatpush1.msk.msra.mxu0 %vm348_vm0, %v307_v27 }
  0x47   : > { %1487 = vmatpush1.msk.msra.mxu1 %vm348_vm0, %v309_v28  ;;  %1477 = vmatmul.mubr.msk.f32.vlgmr.msra.gmra.mrb[0].mxu0 %vm320_vm1, %v311_v29  ;;  %p1750_p3 = por %p1749_p1, %p1748_p10 }
  0x48   : > { %1488 = vmatmul.mubr.msk.f32.vlgmr.msra.gmra.mrb[0].mxu1 %vm320_vm1, %v311_v29  ;;  %431 = vmatprep.mubr.f32.mxu0 %v1813_v0 }
  0x49   : > { %550 = vmatprep.mubr.f32.mxu1 %v1813_v0  ;;  %p1751_p5 = pnand %p1750_p3, %p1744_p4 }
  0x4b   : > { %1478 = vmatmul.mubr.msk.f32.gmra.mrb[2].mxu0 %vm320_vm1, %v312_v30 }
  0x4c   : > { %1489 = vmatmul.mubr.msk.f32.gmra.mrb[2].mxu1 %vm320_vm1, %v312_v30  ;;  %437 = vmatprep.mubr.f32.mxu0 %v1813_v0 }
  0x4d   : > { %556 = vmatprep.mubr.f32.mxu1 %v1813_v0 }
  0x4f   : > { %1479 = vmatmul.mubr.msk.f32.gmra.mrb[4].mxu0 %vm320_vm1, %v313_v31 }
  0x50   : > { %1490 = vmatmul.mubr.msk.f32.gmra.mrb[4].mxu1 %vm320_vm1, %v313_v31  ;;  %443 = vmatprep.mubr.f32.mxu0 %v1813_v0 }
  0x51   : > { %562 = vmatprep.mubr.f32.mxu1 %v1813_v0 }
  0x53   : > { %1480 = vmatmul.mubr.msk.f32.gmra.mrb[6].mxu0 %vm320_vm1, %v314_v32 }
  0x54   : > { %1491 = vmatmul.mubr.msk.f32.gmra.mrb[6].mxu1 %vm320_vm1, %v314_v32  ;;  %449 = vmatprep.mubr.f32.mxu0 %v1813_v0 }
  0x55   : > { %568 = vmatprep.mubr.f32.mxu1 %v1813_v0 }
  0x57   : > { %1481 = vmatmul.mubr.msk.f32.gmra.mrb[8].mxu0 %vm320_vm1, %v315_v33 }
  0x58   : > { %1492 = vmatmul.mubr.msk.f32.gmra.mrb[8].mxu1 %vm320_vm1, %v315_v33  ;;  %455 = vmatprep.mubr.f32.mxu0 %v1813_v0 }
  0x59   : > { %574 = vmatprep.mubr.f32.mxu1 %v1813_v0 }
  0x5b   : > { %1482 = vmatmul.mubr.msk.f32.gmra.mrb[10].mxu0 %vm320_vm1, %v316_v34 }
  0x5c   : > { %1493 = vmatmul.mubr.msk.f32.gmra.mrb[10].mxu1 %vm320_vm1, %v316_v34  ;;  %461 = vmatprep.mubr.f32.mxu0 %v1813_v0 }
  0x5d   : > { %580 = vmatprep.mubr.f32.mxu1 %v1813_v0 }
  0x5f   : > { %1483 = vmatmul.mubr.msk.f32.gmra.mrb[12].mxu0 %vm320_vm1, %v317_v35 }
  0x60   : > { %1494 = vmatmul.mubr.msk.f32.gmra.mrb[12].mxu1 %vm320_vm1, %v317_v35  ;;  %467 = vmatprep.mubr.f32.mxu0 %v1813_v0 }
  0x61   : > { %586 = vmatprep.mubr.f32.mxu1 %v1813_v0 }
  0x63   : > { %1484 = vmatmul.mubr.msk.f32.gmra.mrb[14].mxu0 %vm320_vm1, %v318_v36 }
  0x64   : > { %1495 = vmatmul.mubr.msk.f32.gmra.mrb[14].mxu1 %vm320_vm1, %v318_v36  ;;  %473 = vmatprep.mubr.f32.mxu0 %v1813_v0 }
  0x65   : > { %592 = vmatprep.mubr.f32.mxu1 %v1813_v0 }
  0x67   : > { %1485 = vmatmul.mubr.msk.f32.gmra.mrb[16].mxu0 %vm320_vm1, %v319_v37 }
  0x68   : > { %1496 = vmatmul.mubr.msk.f32.gmra.mrb[16].mxu1 %vm320_vm1, %v319_v37  ;;  %749 = vmatprep.mubr.f32.mxu0 %v1813_v0 }
  0x69   : > { %868 = vmatprep.mubr.f32.mxu1 %v1813_v0 }
 0x11a   : > { %v427_v38 = vpop.f32.mrb[0].mxu0 }
 0x11b   : > { %v546_v39 = vpop.f32.mrb[0].mxu1  ;;  %v429_v40 = vpop.f32.mrb[1].mxu0  ;;  %v599_v43 = vmax.f32 %v427_v38, 0.0 }
 0x11c   : > { %v548_v41 = vpop.f32.mrb[1].mxu1  ;;  %v601_v47 = vmax.f32 %v546_v39, 0.0  ;;  %v600_v48 = vmax.f32 %v429_v40, 0.0 }
 0x11d   : > { %v602_v52 = vmax.f32 %v548_v41, 0.0 }
 0x11e   : > { %v433_v42 = vpop.f32.mrb[2].mxu0 }
 0x11f   : > { %v603_v44 = vmax.f32 %v433_v42, 0.0  ;;  %v552_v45 = vpop.f32.mrb[2].mxu1  ;;  %v435_v46 = vpop.f32.mrb[3].mxu0 }
 0x120   : > { %v605_v49 = vmax.f32 %v552_v45, 0.0  ;;  %v604_v50 = vmax.f32 %v435_v46, 0.0  ;;  %v554_v51 = vpop.f32.mrb[3].mxu1 }
 0x121   : > { %v1556_v53 = vpack.c.bf16 %v603_v44, %v599_v43  ;;  %v606_v54 = vmax.f32 %v554_v51, 0.0 }
 0x122   : > { %v1572_v55 = vpack.c.bf16 %v605_v49, %v601_v47  ;;  %v1554_v56 = vpack.c.bf16 %v604_v50, %v600_v48  ;;  %v439_v57 = vpop.f32.mrb[4].mxu0 }
 0x123   : > { %v1570_v58 = vpack.c.bf16 %v606_v54, %v602_v52  ;;  %v558_v59 = vpop.f32.mrb[4].mxu1  ;;  %v441_v60 = vpop.f32.mrb[5].mxu0  ;;  %v607_v63 = vmax.f32 %v439_v57, 0.0 }
 0x124   : > { %v560_v61 = vpop.f32.mrb[5].mxu1  ;;  %1555 = vmatprep.subr.bf16.mxu0 %v1554_v56  ;;  %v609_v4 = vmax.f32 %v558_v59, 0.0  ;;  %v608_v5 = vmax.f32 %v441_v60, 0.0 }
 0x125   : > { %1571 = vmatprep.subr.bf16.mxu1 %v1570_v58  ;;  %1557 = vmatpush1.bf16.msra.mxu0 %v1556_v53  ;;  %v610_v9 = vmax.f32 %v560_v61, 0.0 }
 0x126   : > { %1573 = vmatpush1.bf16.msra.mxu1 %v1572_v55  ;;  %v445_v62 = vpop.f32.mrb[6].mxu0 }
 0x127   : > { %v611_v1 = vmax.f32 %v445_v62, 0.0  ;;  %v564_v2 = vpop.f32.mrb[6].mxu1  ;;  %v447_v3 = vpop.f32.mrb[7].mxu0  ;;  %v635_v62 = vld [vmem:[%s2221_s3] sm:$0xff] }
 0x128   : > { %v613_v6 = vmax.f32 %v564_v2, 0.0  ;;  %v612_v7 = vmax.f32 %v447_v3, 0.0  ;;  %v566_v8 = vpop.f32.mrb[7].mxu1  ;;  %v637_v2 = vld [vmem:[%s2221_s3 + $0x10] sm:$0xff]  ;;  %v638_v3 = vld [vmem:[%s2221_s3 + $0x18] sm:$0xff] }
 0x129   : > { %v1560_v10 = vpack.c.bf16 %v611_v1, %v607_v63  ;;  %v614_v11 = vmax.f32 %v566_v8, 0.0  ;;  %v636_v1 = vld [vmem:[%s2221_s3 + $0x8] sm:$0xff]  ;;  %v643_v8 = vld [vmem:[%s2221_s3 + $0x40] sm:$0x1] }
 0x12a   : > { %v1576_v12 = vpack.c.bf16 %v613_v6, %v609_v4  ;;  %v1558_v13 = vpack.c.bf16 %v612_v7, %v608_v5  ;;  %v451_v14 = vpop.f32.mrb[8].mxu0  ;;  %v639_v4 = vld [vmem:[%s2221_s3 + $0x20] sm:$0xff]  ;;  %v640_v5 = vld [vmem:[%s2221_s3 + $0x28] sm:$0xff]  ;;  %v641_v6 = vld [vmem:[%s2221_s3 + $0x30] sm:$0xff] }
 0x12b   : > { %v1574_v15 = vpack.c.bf16 %v614_v11, %v610_v9  ;;  %v570_v16 = vpop.f32.mrb[8].mxu1  ;;  %v453_v17 = vpop.f32.mrb[9].mxu0  ;;  %v615_v20 = vmax.f32 %v451_v14, 0.0  ;;  %v642_v7 = vld [vmem:[%s2221_s3 + $0x38] sm:$0xff] }
 0x12c   : > { %v572_v18 = vpop.f32.mrb[9].mxu1  ;;  %1559 = vmatprep.subr.bf16.mxu0 %v1558_v13  ;;  %v617_v24 = vmax.f32 %v570_v16, 0.0  ;;  %v616_v25 = vmax.f32 %v453_v17, 0.0 }
 0x12d   : > { %1575 = vmatprep.subr.bf16.mxu1 %v1574_v15  ;;  %1561 = vmatpush1.bf16.msra.mxu0 %v1560_v10  ;;  %v618_v29 = vmax.f32 %v572_v18, 0.0 }
 0x12e   : > { %1577 = vmatpush1.bf16.msra.mxu1 %v1576_v12  ;;  %v457_v19 = vpop.f32.mrb[10].mxu0 }
 0x12f   : > { %v619_v21 = vmax.f32 %v457_v19, 0.0  ;;  %v576_v22 = vpop.f32.mrb[10].mxu1  ;;  %v459_v23 = vpop.f32.mrb[11].mxu0 }
 0x130   : > { %v621_v26 = vmax.f32 %v576_v22, 0.0  ;;  %v620_v27 = vmax.f32 %v459_v23, 0.0  ;;  %v578_v28 = vpop.f32.mrb[11].mxu1 }
 0x131   : > { %v1564_v30 = vpack.c.bf16 %v619_v21, %v615_v20  ;;  %v622_v31 = vmax.f32 %v578_v28, 0.0 }
 0x132   : > { %v1580_v32 = vpack.c.bf16 %v621_v26, %v617_v24  ;;  %v1562_v33 = vpack.c.bf16 %v620_v27, %v616_v25  ;;  %v463_v34 = vpop.f32.mrb[12].mxu0 }
 0x133   : > { %v1578_v35 = vpack.c.bf16 %v622_v31, %v618_v29  ;;  %v582_v36 = vpop.f32.mrb[12].mxu1  ;;  %v465_v37 = vpop.f32.mrb[13].mxu0  ;;  %v623_v40 = vmax.f32 %v463_v34, 0.0 }
 0x134   : > { %v584_v38 = vpop.f32.mrb[13].mxu1  ;;  %1563 = vmatprep.subr.bf16.mxu0 %v1562_v33  ;;  %v625_v44 = vmax.f32 %v582_v36, 0.0  ;;  %v624_v45 = vmax.f32 %v465_v37, 0.0 }
 0x135   : > { %1579 = vmatprep.subr.bf16.mxu1 %v1578_v35  ;;  %1565 = vmatpush1.bf16.msra.mxu0 %v1564_v30  ;;  %v626_v49 = vmax.f32 %v584_v38, 0.0 }
 0x136   : > { %1581 = vmatpush1.bf16.msra.mxu1 %v1580_v32  ;;  %v469_v39 = vpop.f32.mrb[14].mxu0 }
 0x137   : > { %v627_v41 = vmax.f32 %v469_v39, 0.0  ;;  %v588_v42 = vpop.f32.mrb[14].mxu1  ;;  %v471_v43 = vpop.f32.mrb[15].mxu0 }
 0x138   : > { %v629_v46 = vmax.f32 %v588_v42, 0.0  ;;  %v628_v47 = vmax.f32 %v471_v43, 0.0  ;;  %v590_v48 = vpop.f32.mrb[15].mxu1 }
 0x139   : > { %v1568_v50 = vpack.c.bf16 %v627_v41, %v623_v40  ;;  %v630_v51 = vmax.f32 %v590_v48, 0.0 }
 0x13a   : > { %v1584_v52 = vpack.c.bf16 %v629_v46, %v625_v44  ;;  %v1566_v53 = vpack.c.bf16 %v628_v47, %v624_v45  ;;  %v475_v54 = vpop.f32.mrb[16].mxu0 }
 0x13b   : > { %v1582_v55 = vpack.c.bf16 %v630_v51, %v626_v49  ;;  %v594_v56 = vpop.f32.mrb[16].mxu1  ;;  %v477_v57 = vpop.f32.mrb[17].mxu0  ;;  %v631_v61 = vmax.f32 %v475_v54, 0.0 }
 0x13c   : > { %1567 = vmatprep.subr.bf16.mxu0 %v1566_v53  ;;  %v632_v58 = vmax.f32 %v477_v57, 0.0  ;;  %v596_v59 = vpop.f32.mrb[17].mxu1  ;;  %v633_v63 = vmax.f32 %v594_v56, 0.0 }
 0x13d   : > { %1583 = vmatprep.subr.bf16.mxu1 %v1582_v55  ;;  %v634_v60 = vmax.f32 %v596_v59, 0.0  ;;  %1569 = vmatpush1.bf16.msra.mxu0 %v1568_v50 }
 0x13e   : > { %1585 = vmatpush1.bf16.msra.mxu1 %v1584_v52  ;;  %1497 = vmatprep.subr.msk.mxu0 %vm672_vm2, %v632_v58 }
 0x13f   : > { %1508 = vmatprep.subr.msk.mxu1 %vm672_vm2, %v634_v60 }
 0x141   : > { %1498 = vmatpush1.msk.msra.mxu0 %vm672_vm2, %v631_v61 }
 0x142   : > { %1509 = vmatpush1.msk.msra.mxu1 %vm672_vm2, %v633_v63  ;;  %1499 = vmatmul.mubr.msk.f32.vlgmr.msra.gmra.mrb[18].mxu0 %vm644_vm3, %v635_v62 }
 0x143   : > { %1510 = vmatmul.mubr.msk.f32.vlgmr.msra.gmra.mrb[18].mxu1 %vm644_vm3, %v635_v62  ;;  %755 = vmatprep.mubr.f32.mxu0 %v1813_v0 }
 0x144   : > { %874 = vmatprep.mubr.f32.mxu1 %v1813_v0 }
 0x146   : > { %1500 = vmatmul.mubr.msk.f32.gmra.mrb[20].mxu0 %vm644_vm3, %v636_v1 }
 0x147   : > { %1511 = vmatmul.mubr.msk.f32.gmra.mrb[20].mxu1 %vm644_vm3, %v636_v1  ;;  %761 = vmatprep.mubr.f32.mxu0 %v1813_v0 }
 0x148   : > { %880 = vmatprep.mubr.f32.mxu1 %v1813_v0 }
 0x14a   : > { %1501 = vmatmul.mubr.msk.f32.gmra.mrb[22].mxu0 %vm644_vm3, %v637_v2 }
 0x14b   : > { %1512 = vmatmul.mubr.msk.f32.gmra.mrb[22].mxu1 %vm644_vm3, %v637_v2  ;;  %767 = vmatprep.mubr.f32.mxu0 %v1813_v0 }
 0x14c   : > { %886 = vmatprep.mubr.f32.mxu1 %v1813_v0 }
 0x14e   : > { %1502 = vmatmul.mubr.msk.f32.gmra.mrb[24].mxu0 %vm644_vm3, %v638_v3 }
 0x14f   : > { %1513 = vmatmul.mubr.msk.f32.gmra.mrb[24].mxu1 %vm644_vm3, %v638_v3  ;;  %773 = vmatprep.mubr.f32.mxu0 %v1813_v0 }
 0x150   : > { %892 = vmatprep.mubr.f32.mxu1 %v1813_v0 }
 0x152   : > { %1503 = vmatmul.mubr.msk.f32.gmra.mrb[26].mxu0 %vm644_vm3, %v639_v4 }
 0x153   : > { %1514 = vmatmul.mubr.msk.f32.gmra.mrb[26].mxu1 %vm644_vm3, %v639_v4  ;;  %779 = vmatprep.mubr.f32.mxu0 %v1813_v0 }
 0x154   : > { %898 = vmatprep.mubr.f32.mxu1 %v1813_v0 }
 0x156   : > { %1504 = vmatmul.mubr.msk.f32.gmra.mrb[28].mxu0 %vm644_vm3, %v640_v5 }
 0x157   : > { %1515 = vmatmul.mubr.msk.f32.gmra.mrb[28].mxu1 %vm644_vm3, %v640_v5  ;;  %785 = vmatprep.mubr.f32.mxu0 %v1813_v0 }
 0x158   : > { %904 = vmatprep.mubr.f32.mxu1 %v1813_v0 }
 0x15a   : > { %1505 = vmatmul.mubr.msk.f32.gmra.mrb[30].mxu0 %vm644_vm3, %v641_v6 }
 0x15b   : > { %1516 = vmatmul.mubr.msk.f32.gmra.mrb[30].mxu1 %vm644_vm3, %v641_v6  ;;  %791 = vmatprep.mubr.f32.mxu0 %v1813_v0 }
 0x15c   : > { %910 = vmatprep.mubr.f32.mxu1 %v1813_v0 }
 0x15e   : > { %1506 = vmatmul.mubr.msk.f32.gmra.mrb[32].mxu0 %vm644_vm3, %v642_v7 }
 0x15f   : > { %1517 = vmatmul.mubr.msk.f32.gmra.mrb[32].mxu1 %vm644_vm3, %v642_v7  ;;  %797 = vmatprep.mubr.f32.mxu0 %v1813_v0 }
 0x160   : > { %916 = vmatprep.mubr.f32.mxu1 %v1813_v0 }
 0x162   : > { %1507 = vmatmul.mubr.msk.f32.gmra.mrb[34].mxu0 %vm644_vm3, %v643_v8 }
 0x163   : > { %1518 = vmatmul.mubr.msk.f32.gmra.mrb[34].mxu1 %vm644_vm3, %v643_v8  ;;  %1039 = vmatprep.mubr.f32.mxu0 %v1813_v0 }
 0x164   : > { %1110 = vmatprep.mubr.f32.mxu1 %v1813_v0 }
 0x215   : > { %v751_v9 = vpop.f32.mrb[18].mxu0 }
 0x216   : > { %v870_v10 = vpop.f32.mrb[18].mxu1  ;;  %v753_v11 = vpop.f32.mrb[19].mxu0  ;;  %v923_v14 = vmax.f32 %v751_v9, 0.0 }
 0x217   : > { %v872_v12 = vpop.f32.mrb[19].mxu1  ;;  %v925_v18 = vmax.f32 %v870_v10, 0.0  ;;  %v924_v19 = vmax.f32 %v753_v11, 0.0 }
 0x218   : > { %v926_v23 = vmax.f32 %v872_v12, 0.0 }
 0x219   : > { %v757_v13 = vpop.f32.mrb[20].mxu0 }
 0x21a   : > { %v927_v15 = vmax.f32 %v757_v13, 0.0  ;;  %v876_v16 = vpop.f32.mrb[20].mxu1  ;;  %v759_v17 = vpop.f32.mrb[21].mxu0 }
 0x21b   : > { %v929_v20 = vmax.f32 %v876_v16, 0.0  ;;  %v928_v21 = vmax.f32 %v759_v17, 0.0  ;;  %v878_v22 = vpop.f32.mrb[21].mxu1 }
 0x21c   : > { %v2113_v24 = vpack.c.bf16 %v927_v15, %v923_v14  ;;  %v930_v25 = vmax.f32 %v878_v22, 0.0 }
 0x21d   : > { %v2115_v26 = vpack.c.bf16 %v929_v20, %v925_v18  ;;  %v2117_v27 = vpack.c.bf16 %v928_v21, %v924_v19  ;;  %v763_v28 = vpop.f32.mrb[22].mxu0 }
 0x21e   : > { %v2119_v29 = vpack.c.bf16 %v930_v25, %v926_v23  ;;  %v882_v30 = vpop.f32.mrb[22].mxu1  ;;  %v765_v31 = vpop.f32.mrb[23].mxu0  ;;  %v931_v34 = vmax.f32 %v763_v28, 0.0 }
 0x21f   : > { %v884_v32 = vpop.f32.mrb[23].mxu1  ;;  %1587 = vmatprep.subr.bf16.mxu0 %v2117_v27  ;;  %v933_v38 = vmax.f32 %v882_v30, 0.0  ;;  %v932_v39 = vmax.f32 %v765_v31, 0.0 }
 0x220   : > { %1603 = vmatprep.subr.bf16.mxu1 %v2119_v29  ;;  %1589 = vmatpush1.bf16.msra.mxu0 %v2113_v24  ;;  %v934_v43 = vmax.f32 %v884_v32, 0.0 }
 0x221   : > { %1605 = vmatpush1.bf16.msra.mxu1 %v2115_v26  ;;  %v769_v33 = vpop.f32.mrb[24].mxu0 }
 0x222   : > { %v935_v35 = vmax.f32 %v769_v33, 0.0  ;;  %v888_v36 = vpop.f32.mrb[24].mxu1  ;;  %v771_v37 = vpop.f32.mrb[25].mxu0 }
 0x223   : > { %v937_v40 = vmax.f32 %v888_v36, 0.0  ;;  %v936_v41 = vmax.f32 %v771_v37, 0.0  ;;  %v890_v42 = vpop.f32.mrb[25].mxu1 }
 0x224   : > { %v2125_v44 = vpack.c.bf16 %v935_v35, %v931_v34  ;;  %v938_v45 = vmax.f32 %v890_v42, 0.0 }
 0x225   : > { %v2127_v46 = vpack.c.bf16 %v937_v40, %v933_v38  ;;  %v2129_v47 = vpack.c.bf16 %v936_v41, %v932_v39  ;;  %v775_v48 = vpop.f32.mrb[26].mxu0  ;;  %v959_v38 = vld [vmem:[%s2222_s4] sm:$0x1] }
 0x226   : > { %v2131_v49 = vpack.c.bf16 %v938_v45, %v934_v43  ;;  %v894_v50 = vpop.f32.mrb[26].mxu1  ;;  %v777_v51 = vpop.f32.mrb[27].mxu0  ;;  %v939_v54 = vmax.f32 %v775_v48, 0.0 }
 0x227   : > { %v896_v52 = vpop.f32.mrb[27].mxu1  ;;  %1591 = vmatprep.subr.bf16.mxu0 %v2129_v47  ;;  %v941_v58 = vmax.f32 %v894_v50, 0.0  ;;  %v940_v59 = vmax.f32 %v777_v51, 0.0 }
 0x228   : > { %1607 = vmatprep.subr.bf16.mxu1 %v2131_v49  ;;  %1593 = vmatpush1.bf16.msra.mxu0 %v2125_v44  ;;  %v942_v63 = vmax.f32 %v896_v52, 0.0 }
 0x229   : > { %1609 = vmatpush1.bf16.msra.mxu1 %v2127_v46  ;;  %v781_v53 = vpop.f32.mrb[28].mxu0 }
 0x22a   : > { %v943_v55 = vmax.f32 %v781_v53, 0.0  ;;  %v900_v56 = vpop.f32.mrb[28].mxu1  ;;  %v783_v57 = vpop.f32.mrb[29].mxu0 }
 0x22b   : > { %v945_v60 = vmax.f32 %v900_v56, 0.0  ;;  %v944_v61 = vmax.f32 %v783_v57, 0.0  ;;  %v902_v62 = vpop.f32.mrb[29].mxu1 }
 0x22c   : > { %v1596_v1 = vpack.c.bf16 %v943_v55, %v939_v54  ;;  %v946_v2 = vmax.f32 %v902_v62, 0.0 }
 0x22d   : > { %v1612_v3 = vpack.c.bf16 %v945_v60, %v941_v58  ;;  %v1594_v4 = vpack.c.bf16 %v944_v61, %v940_v59  ;;  %v787_v5 = vpop.f32.mrb[30].mxu0 }
 0x22e   : > { %v1610_v6 = vpack.c.bf16 %v946_v2, %v942_v63  ;;  %v906_v7 = vpop.f32.mrb[30].mxu1  ;;  %v789_v8 = vpop.f32.mrb[31].mxu0  ;;  %v947_v11 = vmax.f32 %v787_v5, 0.0 }
 0x22f   : > { %v908_v9 = vpop.f32.mrb[31].mxu1  ;;  %1595 = vmatprep.subr.bf16.mxu0 %v1594_v4  ;;  %v949_v15 = vmax.f32 %v906_v7, 0.0  ;;  %v948_v16 = vmax.f32 %v789_v8, 0.0 }
 0x230   : > { %1611 = vmatprep.subr.bf16.mxu1 %v1610_v6  ;;  %1597 = vmatpush1.bf16.msra.mxu0 %v1596_v1  ;;  %v950_v20 = vmax.f32 %v908_v9, 0.0 }
 0x231   : > { %1613 = vmatpush1.bf16.msra.mxu1 %v1612_v3  ;;  %v793_v10 = vpop.f32.mrb[32].mxu0 }
 0x232   : > { %v951_v12 = vmax.f32 %v793_v10, 0.0  ;;  %v912_v13 = vpop.f32.mrb[32].mxu1  ;;  %v795_v14 = vpop.f32.mrb[33].mxu0 }
 0x233   : > { %v953_v17 = vmax.f32 %v912_v13, 0.0  ;;  %v952_v18 = vmax.f32 %v795_v14, 0.0  ;;  %v914_v19 = vpop.f32.mrb[33].mxu1  ;;  %v1263_v13 = vld [vmem:[%s288_s15] sm:$0xf] }
 0x234   : > { %v1600_v21 = vpack.c.bf16 %v951_v12, %v947_v11  ;;  %v954_v22 = vmax.f32 %v914_v19, 0.0 }
 0x235   : > { %v1616_v23 = vpack.c.bf16 %v953_v17, %v949_v15  ;;  %v1598_v25 = vpack.c.bf16 %v952_v18, %v948_v16  ;;  %v799_v28 = vpop.f32.mrb[34].mxu0 }
 0x236   : > { %v1614_v30 = vpack.c.bf16 %v954_v22, %v950_v20  ;;  %v918_v31 = vpop.f32.mrb[34].mxu1  ;;  %v801_v32 = vpop.f32.mrb[35].mxu0  ;;  %v955_v36 = vmax.f32 %v799_v28, 0.0 }
 0x237   : > { %1599 = vmatprep.subr.bf16.mxu0 %v1598_v25  ;;  %v956_v33 = vmax.f32 %v801_v32, 0.0  ;;  %v920_v34 = vpop.f32.mrb[35].mxu1  ;;  %v957_v37 = vmax.f32 %v918_v31, 0.0 }
 0x238   : > { %1615 = vmatprep.subr.bf16.mxu1 %v1614_v30  ;;  %v958_v35 = vmax.f32 %v920_v34, 0.0  ;;  %1601 = vmatpush1.bf16.msra.mxu0 %v1600_v21 }
 0x239   : > { %1617 = vmatpush1.bf16.msra.mxu1 %v1616_v23  ;;  %1519 = vmatprep.subr.msk.mxu0 %vm672_vm2, %v956_v33 }
 0x23a   : > { %1522 = vmatprep.subr.msk.mxu1 %vm672_vm2, %v958_v35 }
 0x23c   : > { %1520 = vmatpush1.msk.msra.mxu0 %vm672_vm2, %v955_v36 }
 0x23d   : > { %1523 = vmatpush1.msk.msra.mxu1 %vm672_vm2, %v957_v37  ;;  %1619 = vmatprep.subr.bf16.mxu0 %v2117_v27  ;;  %v1273_v27 = vlaneseq }
 0x23e   : > { %1635 = vmatprep.subr.bf16.mxu1 %v2119_v29  ;;  %1521 = vmatmul.mubr.msk.f32.vlgmr.msra.gmra.mrb[36].mxu0 %vm644_vm3, %v959_v38 }
 0x23f   : > { %1524 = vmatmul.mubr.msk.f32.vlgmr.msra.gmra.mrb[36].mxu1 %vm644_vm3, %v959_v38  ;;  %1621 = vmatpush1.bf16.msra.mxu0 %v2113_v24  ;;  %v1814_v24 = vmov 1966171168   ;;  %v1274_v39 = vshrl.u32 %v1273_v27, 7  ;;  %vm1370_vm4 = vcmp.lt.s32.totalorder %v1273_v27, 512 }
 0x240   : > { %1637 = vmatpush1.bf16.msra.mxu1 %v2115_v26  ;;  %1623 = vmatprep.subr.bf16.mxu0 %v2129_v47  ;;  %v1271_v26 = vunpack.c.l.s4 %v1814_v24 }
 0x241   : > { %1639 = vmatprep.subr.bf16.mxu1 %v2131_v49  ;;  %1185 = vmatprep.mubr.f32.mxu0 %v1813_v0 }
 0x242   : > { %1256 = vmatprep.mubr.f32.mxu1 %v1813_v0  ;;  %v1117_v0 = vld [vmem:[%s2223_s5] sm:$0x1]  ;;  %v1272_v29 = vunpack.c.0.s8 %v1271_v26 }
 0x243   : > { %1625 = vmatpush1.bf16.msra.mxu0 %v2125_v44 }
 0x244   : > { %1641 = vmatpush1.bf16.msra.mxu1 %v2127_v46  ;;  %1627 = vmatprep.subr.bf16.mxu0 %v1594_v4  ;;  %v1275_v41 = vsub.s32 %v1272_v29, %v1274_v39 }
 0x245   : > { %1643 = vmatprep.subr.bf16.mxu1 %v1610_v6 }
 0x247   : > { %1629 = vmatpush1.bf16.msra.mxu0 %v1596_v1 }
 0x248   : > { %1645 = vmatpush1.bf16.msra.mxu1 %v1612_v3  ;;  %1631 = vmatprep.subr.bf16.mxu0 %v1598_v25 }
 0x249   : > { %1647 = vmatprep.subr.bf16.mxu1 %v1614_v30 }
 0x24b   : > { %1633 = vmatpush1.bf16.msra.mxu0 %v1600_v21 }
 0x24c   : > { %1649 = vmatpush1.bf16.msra.mxu1 %v1616_v23  ;;  %1525 = vmatprep.subr.msk.mxu0 %vm672_vm2, %v956_v33 }
 0x24d   : > { %1528 = vmatprep.subr.msk.mxu1 %vm672_vm2, %v958_v35 }
 0x24f   : > { %1526 = vmatpush1.msk.msra.mxu0 %vm672_vm2, %v955_v36 }
 0x250   : > { %1529 = vmatpush1.msk.msra.mxu1 %vm672_vm2, %v957_v37  ;;  %1527 = vmatmul.mubr.msk.f32.vlgmr.msra.gmra.mrb[38].mxu0 %vm644_vm3, %v1117_v0 }
 0x251   : > { %1530 = vmatmul.mubr.msk.f32.vlgmr.msra.gmra.mrb[38].mxu1 %vm644_vm3, %v1117_v0 }
 0x311   : > { %v1041_v40 = vpop.f32.mrb[36].mxu0 }
 0x312   : > { %v1112_v42 = vpop.f32.mrb[36].mxu1  ;;  %v1043_v43 = vpop.f32.mrb[37].mxu0 }
 0x313   : > { %v1268_v44 = vcombine.low %v1041_v40, %v1043_v43  ;;  %v1114_v45 = vpop.f32.mrb[37].mxu1 }
 0x314   : > { %v1269_v46 = vcombine.low %v1112_v42, %v1114_v45 }
 0x315   : > { %v1276_v47 = vrot.slane %v1268_v44, %v1275_v41 }
 0x316   : > { %v1283_v48 = vrot.slane %v1269_v46, %v1275_v41 }
 0x318   : > { %v1284_v49 = vcombine.low %v1276_v47, %v1283_v48 }
 0x31a   : > { %v1291_v11 = vrot.slane %v1284_v49, %v1275_v41 }
 0x31c   : > { %v1293_v15 = vsub.f32 %v1263_v13, %v1291_v11 }
 0x323   : > { %v1187_v50 = vpop.f32.mrb[38].mxu0 }
 0x324   : > { %v1294_v51 = vsub.f32 0.0, %v1187_v50  ;;  %v1258_v52 = vpop.f32.mrb[38].mxu1  ;;  %v1189_v53 = vpop.f32.mrb[39].mxu0 }
 0x325   : > { %v1296_v54 = vsub.f32 0.0, %v1258_v52  ;;  %v1295_v55 = vsub.f32 0.0, %v1189_v53  ;;  %v1342_v56 = vcombine.low %v1187_v50, %v1189_v53  ;;  %v1260_v57 = vpop.f32.mrb[39].mxu1 }
 0x326   : > { %v1298_v58 = vmul.f32 1.442695, %v1294_v51  ;;  %v1297_v59 = vsub.f32 0.0, %v1260_v57  ;;  %v1343_v60 = vcombine.low %v1258_v52, %v1260_v57 }
 0x327   : > { %v1302_v61 = vmul.f32 1.442695, %v1296_v54  ;;  %v1300_v62 = vmul.f32 1.442695, %v1295_v55  ;;  %v1350_v63 = vrot.slane %v1342_v56, %v1275_v41 }
 0x328   : > { %1703 = vpow2.f32 %v1298_v58  ;;  %v1304_v1 = vmul.f32 1.442695, %v1297_v59  ;;  %v1357_v2 = vrot.slane %v1343_v60, %v1275_v41 }
 0x329   : > { %1705 = vpow2.f32 %v1302_v61 }
 0x32a   : > { %1707 = vpow2.f32 %v1300_v62  ;;  %v1358_v3 = vcombine.low %v1350_v63, %v1357_v2 }
 0x32b   : > { %1709 = vpow2.f32 %v1304_v1 }
 0x32c   : > { %v1365_v20 = vrot.slane %v1358_v3, %v1275_v41 }
 0x332   : > { %v1704_v4 = vpop.eup %1703 }
 0x333   : > { %v1706_v5 = vpop.eup %1705 }
 0x334   : > { %v1708_v6 = vpop.eup %1707 }
 0x335   : > { %v1710_v7 = vpop.eup %1709  ;;  %v1310_v8 = vcombine.low %v1704_v4, %v1708_v6 }
 0x336   : > { %v1311_v9 = vcombine.low %v1706_v5, %v1710_v7 }
 0x337   : > { %v1318_v10 = vrot.slane %v1310_v8, %v1275_v41 }
 0x338   : > { %v1325_v12 = vrot.slane %v1311_v9, %v1275_v41 }
 0x33a   : > { %v1326_v14 = vcombine.low %v1318_v10, %v1325_v12 }
 0x33c   : > { %v1333_v16 = vrot.slane %v1326_v14, %v1275_v41 }
 0x33e   : > { %v1335_v17 = vmul.f32 %v1333_v16, %v1293_v15 }
 0x340   : > { %v1336_v18 = vmul.f32 0.5, %v1335_v17 }
 0x342   : > { %v1337_v19 = vmul.f32 %v1336_v18, %v1335_v17 }
 0x344   : > { %v1367_v21 = vadd.f32 %v1365_v20, %v1337_v19 }
 0x346   : > { %1372 = vst.msk [vmem:[%s283_s19] sm:$0xf] %vm1370_vm4, %v1367_v21 }
 0x347   : > { %1754 = shalt.err (!%p1751_p5)
}
 0x348   : > { %s1755_s29 = scalar_lea.hbm %s2174_s20, 64  ;;  %s1759_s15 = scalar_lea.hbm %s2224_s6, 128 }
 0x349   : > { %p1756_p7 = scmp.ne.s32.totalorder %s2174_s20, %s1755_s29  ;;  %p1760_p0 = scmp.lt.u32.totalorder %s2174_s20, %s2224_s6 }
 0x34a   : > { %p1761_p2 = scmp.lt.u32.totalorder %s1759_s15, %s1755_s29  ;;  %p1763_p11 = scmp.lt.u32.totalorder %s1755_s29, %s2174_s20 }
 0x34b   : > { %p1757_p8 = pnand %p1756_p7, %p2231_p12 }
 0x34c   : > { %p1762_p6 = por %p1761_p2, %p1760_p0 }
 0x34d   : > { %p1758_p9 = pneg %p1757_p8 }
 0x34e   : > { %p1764_p13 = por %p1763_p11, %p1762_p6 }
 0x350   : > { %p1765_p4 = pnand %p1764_p13, %p1758_p9 }
 0x352   : > { %1768 = shalt.err (!%p1765_p4)
}
 0x353   : > { %1654 = dma.vmem_to_hbm [thread:$0]  (%p2231_p12), %s2176_s13, 64, %s2174_s20, %s1374_s26  }
 0x354 PF: > { %s1400_s19 = sand.u32 1, %s1795_s21   ;;  %p2232_p10 = scmp.ne.s32.totalorder %s2228_s9, 0 }
 0x355   : > { %p2233_p1 = scmp.ge.s32.totalorder %s1807_s24, 2  ;;  %s1401_s14 = scalar_lea.sflag [#allocation4], %s1400_s19 }
 0x357   : > { %p1661_p3 = pnand %p2233_p1, %p2232_p10 }
 0x359   : > { %1790 = dma.done.wait (!%p1661_p3), %s1401_s14, 64  }
 0x35a   : > { %1792 = vsyncadd (!%p1661_p3), %s1401_s14, 4294967232  ;;  %p19_p5 = scmp.ge.s32.totalorder %s1876_s27, 4   ;;  %s2234_s21 = smov %s1799_s22 }
 0x35b   : > { %s2235_s22 = smov %s1803_s23  ;;  %s2236_s23 = smov %s1888_s30 }
 0x35c   : > { %s2237_s24 = smov %s1876_s27  ;;  %21 = sbr.rel (!%p19_p5) target bundleno = 5 (0x5), region = 92 }
 0x363   :  { %1406 = vsyncpa [#allocation3], 1 }
 0x364   :  { %1408 = vsyncpa [#allocation3 + $0x1], 1 }
 0x365   :  { %1409 = vsyncpa [#allocation4], 1 }
 0x366   :  { %1411 = vsyncpa [#allocation4 + $0x1], 1 }

</bundles_post_ra>
